<compile_context>
chip_gen: v7x
topology: tpu7x:2x2x1
jax: 0.10.0
libtpu: 0.0.40
codegen_flags: <defaults>
</compile_context>

<pallas_src>
import functools

import jax
import jax.numpy as jnp
import numpy as np
from jax import lax
from jax.experimental import pallas as pl
from jax.experimental.pallas import tpu as pltpu


def _sds(start, size, stride):
    """Strided pl.ds helper (plain ds when stride == 1)."""
    return pl.ds(start, size) if stride == 1 else pl.ds(start, size, stride)


def _bottleneck_kernel(Bt, L, L_out, K, stride, pad, C_neck, cdtype, use_im2col,
                       x_ref, xs_ref, w1_ref, b1_ref, w2_ref, b2_ref,
                       wtail_ref, btail_ref, o_ref, h1pad_ref):
    """Processes Bt batch elements per grid step.

    x_ref     : (Bt, C_in, L)        input, native NCL block (lane-dense on L)
    xs_ref    : (Bt, L_out, C_in)    strided shortcut input, compute dtype
    w1_ref    : (C_in, C_neck)       head 1x1 conv weight (BN scale folded), bf16
    b1_ref    : (1, C_neck)          head BN bias (f32)
    w2_ref    : (K*C_neck, C_neck)   neck conv weight, im2col row layout, bf16
    b2_ref    : (1, C_neck)          neck BN bias (f32)
    wtail_ref : (C_out, C_neck+C_in) [tail conv | shortcut conv] weight, bf16
    btail_ref : (C_out, 1)           tail BN bias + shortcut BN bias (f32)
    o_ref     : (Bt, C_out, L_out)   output, NCL orientation (lane-dense on L_out)
    h1pad_ref : (L + 2*pad, C_neck)  f32 scratch: zero-padded head output
    """
    # Zero only the 2*pad halo rows, once per grid step.  Never gated on
    # pl.program_id so it stays correct under megacore grid sharding.
    if pad > 0:
        zeros = jnp.zeros((pad, C_neck), h1pad_ref.dtype)
        h1pad_ref[pl.ds(0, pad), :] = zeros
        h1pad_ref[pl.ds(pad + L, pad), :] = zeros

    w1 = w1_ref[...]
    b1 = b1_ref[...]
    w2 = w2_ref[...]
    b2 = b2_ref[...]
    wtail = wtail_ref[...]
    btail = btail_ref[...]

    for bi in range(Bt):        # static unroll; Bt is kept small (<= 8)
        # ---- cba_head: 1x1 conv (BN scale folded) -> +bias -> ReLU ---------
        # x block is (C_in, L); contract over C_in (transposed-LHS matmul) so
        # the result lands positions-on-sublanes, ready for strided tap reads.
        x = x_ref[bi].astype(cdtype)                               # (C_in, L)
        h1 = lax.dot_general(x, w1,
                             dimension_numbers=(((0,), (0,)), ((), ())),
                             preferred_element_type=jnp.float32)   # (L, C_neck)
        h1 = jnp.maximum(h1 + b1, 0.0)
        h1pad_ref[pl.ds(pad, L), :] = h1

        # ---- cba_neck: K-tap conv, stride fused via strided tap loads ------
        if use_im2col:
            # Gather the K strided (L_out, C_neck) views, casting to bf16 at
            # load so the im2col matrix only ever exists in bf16; one matmul
            # with contraction K*C_neck.
            taps = [h1pad_ref[_sds(t, L_out, stride), :].astype(cdtype)
                    for t in range(K)]
            im2col = taps[0] if K == 1 else jnp.concatenate(taps, axis=-1)
            h2 = jnp.dot(im2col, w2,
                         preferred_element_type=jnp.float32)       # (L_out, C_neck)
        else:
            # C_neck already fills the MXU contraction width: K accumulating
            # dots avoid duplicating h1 K times in VMEM.
            h2 = jnp.zeros((L_out, C_neck), jnp.float32)
            for t in range(K):
                tap = h1pad_ref[_sds(t, L_out, stride), :].astype(cdtype)
                h2 = h2 + jnp.dot(tap, w2[t * C_neck:(t + 1) * C_neck, :],
                                  preferred_element_type=jnp.float32)
        h2 = jnp.maximum(h2 + b2, 0.0)

        # ---- cba_tail + shortcut fused into a single MXU dot ---------------
        # feat = [h2 | xs] along features, wtail = [W3 | Wsc]; one trans-B dot
        # produces the (C_out, L_out) output directly in NCL orientation
        # (lane-dense store along L_out).
        feat = jnp.concatenate([h2.astype(cdtype), xs_ref[bi]], axis=-1)
        out = lax.dot_general(wtail, feat,
                              dimension_numbers=(((1,), (1,)), ((), ())),
                              preferred_element_type=jnp.float32)  # (C_out, L_out)
        o_ref[bi] = jnp.maximum(out + btail, 0.0).astype(o_ref.dtype)


def _fold_bn(gamma, beta, mean, var, eps=1e-5):
    scale = (gamma / jnp.sqrt(var + eps)).astype(jnp.float32)
    bias = (beta - mean * scale).astype(jnp.float32)
    return scale, bias


def resnet_bottleneck_pallas(x_ncl, params, *, filter_length, subsample_length,
                             compute_dtype=jnp.bfloat16, out_dtype=None,
                             batch_block=None):
    """Fused ResNetBottleNeck forward.

    x_ncl: (batch, in_channels, seq_len) — the PyTorch layout.
    Returns (batch, out_channels, seq_len // subsample_length) — PyTorch layout.
    `out_dtype=jnp.bfloat16` halves the HBM writeback if the next block accepts it.
    """
    B, C_in, L = x_ncl.shape
    stride = int(subsample_length)
    K = int(filter_length)
    assert K % 2 == 1, "even filter_length ('same' padding) not implemented"
    assert L % stride == 0, "seq_len must be divisible by subsample_length"
    pad = (K - 1) // 2
    L_out = L // stride
    out_dtype = x_ncl.dtype if out_dtype is None else jnp.dtype(out_dtype)

    W1, W2, W3, Wsc = params["W1"], params["W2"], params["W3"], params["Wsc"]
    C_neck = W1.shape[0]
    C_out = W3.shape[0]

    s1, b1 = _fold_bn(*params["bn1"])
    s2, b2 = _fold_bn(*params["bn2"])
    s3, b3 = _fold_bn(*params["bn3"])
    ssc, bsc = _fold_bn(*params["bnsc"])

    # Fold the BN scales into the conv weights (host/wrapper side, free) and
    # lay the weights out for the in-kernel matmuls.
    w1 = (W1[:, :, 0] * s1[:, None]).T.astype(compute_dtype)          # (C_in, C_neck)
    w2 = (jnp.transpose(W2 * s2[:, None, None], (2, 1, 0))
          .reshape(K * C_neck, C_neck)).astype(compute_dtype)         # (K*C_neck, C_neck)
    w3 = W3[:, :, 0] * s3[:, None]                                    # (C_out, C_neck)
    wsc = Wsc[:, :, 0] * ssc[:, None]                                 # (C_out, C_in)
    wtail = jnp.concatenate([w3, wsc], axis=1).astype(compute_dtype)  # (C_out, C_neck+C_in)

    b1r = b1[None, :]                                                 # (1, C_neck)
    b2r = b2[None, :]                                                 # (1, C_neck)
    btail = (b3 + bsc)[:, None]                                       # (C_out, 1)

    # Strided shortcut input only (small, bf16); x itself goes to the kernel
    # untouched in its native, lane-dense NCL layout (no full-x HBM transpose).
    xs = jnp.transpose(x_ncl[:, :, ::stride], (0, 2, 1)).astype(compute_dtype)

    # Shape-aware neck strategy: im2col only while C_neck is below the MXU
    # contraction width (128 lanes; v6e/v7x would tolerate 256).
    use_im2col = C_neck < 128

    # --- batch elements per grid step (amortize ~0.35us/step overhead) ------
    cd_size = jnp.dtype(compute_dtype).itemsize
    x_size = x_ncl.dtype.itemsize
    o_size = jnp.dtype(out_dtype).itemsize
    per_elem = (C_in * L * x_size + C_out * L_out * o_size
                + L_out * C_in * cd_size
                + (K if use_im2col else 1) * L_out * C_neck * cd_size
                + (L + 2 * pad) * C_neck * 4)
    if batch_block is None:
        Bt = 1
        for cand in range(min(B, 8), 1, -1):
            if B % cand == 0 and cand * per_elem <= (2 << 20):
                Bt = cand
                break
    else:
        Bt = int(batch_block)
        assert B % Bt == 0, "batch_block must divide batch"

    kernel = functools.partial(_bottleneck_kernel, Bt, L, L_out, K, stride,
                               pad, C_neck, compute_dtype, use_im2col)

    param_arrays = [w1, b1r, w2, b2r, wtail, btail]

    def _param_spec(a):
        return pl.BlockSpec(a.shape, lambda b, _n=a.ndim: (0,) * _n)

    # VMEM budget: blocks are double-buffered by the pipeline; keep the
    # known-good 32 MiB floor and raise it (v5e/v6e have 128 MiB physical) only
    # when long sequences actually need it.
    # TODO(synk): beyond ~96 MiB (v7x physical is 64 MiB) the L-tile grid axis
    # with an h1 halo is required instead of a bigger scoped limit.
    block_bytes = (Bt * C_in * L * x_size + Bt * L_out * C_in * cd_size
                   + Bt * C_out * L_out * o_size)
    param_bytes = sum(int(np.prod(a.shape)) * a.dtype.itemsize
                      for a in param_arrays)
    interm_bytes = ((K if use_im2col else 1) * L_out * C_neck * cd_size
                    + L * C_neck * 4
                    + L_out * (C_neck + C_in) * (4 + cd_size)
                    + C_out * L_out * 4)
    scratch_bytes = (L + 2 * pad) * C_neck * 4
    est = 2 * (block_bytes + param_bytes) + scratch_bytes + interm_bytes
    vmem_limit = max(32 * 1024 * 1024, min(96 * 1024 * 1024, int(1.5 * est)))

    out_ncl = pl.pallas_call(
        kernel,
        out_shape=jax.ShapeDtypeStruct((B, C_out, L_out), out_dtype),
        grid=(B // Bt,),
        in_specs=[pl.BlockSpec((Bt, C_in, L), lambda b: (b, 0, 0)),
                  pl.BlockSpec((Bt, L_out, C_in), lambda b: (b, 0, 0))]
                 + [_param_spec(a) for a in param_arrays],
        out_specs=pl.BlockSpec((Bt, C_out, L_out), lambda b: (b, 0, 0)),
        scratch_shapes=[pltpu.VMEM((L + 2 * pad, C_neck), jnp.float32)],
        compiler_params=pltpu.CompilerParams(
            dimension_semantics=("parallel",),      # megacore-shardable over batch
            vmem_limit_bytes=vmem_limit),
    )(x_ncl, xs, *param_arrays)

    return out_ncl                                   # already NCL


def _reference(x_ncl, params, *, filter_length, subsample_length):
    """Pure-JAX f32 reference reproducing the PyTorch forward (eval-mode BN)."""
    pad = (filter_length - 1) // 2

    def conv1d(x, w, stride, p):
        return lax.conv_general_dilated(x, w, (stride,), [(p, p)],
                                        dimension_numbers=("NCH", "OIH", "NCH"))

    def bn(x, gamma, beta, mean, var, eps=1e-5):
        inv = gamma / jnp.sqrt(var + eps)
        return (x - mean[None, :, None]) * inv[None, :, None] + beta[None, :, None]

    h = jax.nn.relu(bn(conv1d(x_ncl, params["W1"], 1, 0), *params["bn1"]))
    h = jax.nn.relu(bn(conv1d(h, params["W2"], subsample_length, pad), *params["bn2"]))
    h = bn(conv1d(h, params["W3"], 1, 0), *params["bn3"])
    idn = bn(conv1d(x_ncl, params["Wsc"], subsample_length, 0), *params["bnsc"])
    return jax.nn.relu(h + idn)


if __name__ == "__main__":
    # Module hyper-parameters (small shapes consistent with the 1D forward).
    B, C_in, L = 2, 8, 16
    num_filters, filter_length, subsample_length = 4, 3, 2
    expansion, groups, base_groups = 4, 1, 1
    base_width = default_base_width = 48
    C_neck = int(num_filters * base_width / default_base_width) * groups   # 4
    C_out = num_filters * expansion                                        # 16

    keys = jax.random.split(jax.random.PRNGKey(0), 10)
    x = jax.random.normal(keys[0], (B, C_in, L), jnp.float32)

    def bn_init(k, c):
        k1, k2, k3, k4 = jax.random.split(k, 4)
        gamma = 1.0 + 0.1 * jax.random.normal(k1, (c,), jnp.float32)
        beta = 0.1 * jax.random.normal(k2, (c,), jnp.float32)
        mean = 0.1 * jax.random.normal(k3, (c,), jnp.float32)
        var = jax.nn.softplus(jax.random.normal(k4, (c,), jnp.float32)) + 0.5
        return gamma, beta, mean, var

    params = {
        "W1": 0.2 * jax.random.normal(keys[1], (C_neck, C_in, 1), jnp.float32),
        "W2": 0.2 * jax.random.normal(keys[2], (C_neck, C_neck, filter_length), jnp.float32),
        "W3": 0.2 * jax.random.normal(keys[3], (C_out, C_neck, 1), jnp.float32),
        "Wsc": 0.2 * jax.random.normal(keys[4], (C_out, C_in, 1), jnp.float32),
        "bn1": bn_init(keys[5], C_neck),
        "bn2": bn_init(keys[6], C_neck),
        "bn3": bn_init(keys[7], C_out),
        "bnsc": bn_init(keys[8], C_out),
    }

    out = resnet_bottleneck_pallas(x, params, filter_length=filter_length,
                                   subsample_length=subsample_length)
    out = jax.block_until_ready(out)

    ref = jax.block_until_ready(
        _reference(x, params, filter_length=filter_length,
                   subsample_length=subsample_length))

    assert out.shape == (B, C_out, L // subsample_length), out.shape
    # Kernel uses bf16 MXU operands (f32 accumulation); compare against the
    # pure-f32 reference with a bf16-appropriate tolerance.
    np.testing.assert_allclose(np.asarray(out), np.asarray(ref), rtol=5e-2, atol=5e-2)
    print("KERNEL_OK")
</pallas_src>

<mosaic_0001>
module attributes {stable_mosaic.version = 11 : i64} {
  func.func @_bottleneck_kernel(%arg0: i32, %arg1: memref<2x8x16xf32, #tpu.memory_space<vmem>>, %arg2: memref<2x8x8xbf16, #tpu.memory_space<vmem>>, %arg3: memref<8x4xbf16, #tpu.memory_space<vmem>>, %arg4: memref<1x4xf32, #tpu.memory_space<vmem>>, %arg5: memref<12x4xbf16, #tpu.memory_space<vmem>>, %arg6: memref<1x4xf32, #tpu.memory_space<vmem>>, %arg7: memref<16x12xbf16, #tpu.memory_space<vmem>>, %arg8: memref<16x1xf32, #tpu.memory_space<vmem>>, %arg9: memref<2x16x8xf32, #tpu.memory_space<vmem>>, %arg10: memref<18x4xf32, #tpu.memory_space<vmem>>) attributes {dimension_semantics = [#tpu.dimension_semantics<parallel>], iteration_bounds = array<i64: 1>, scalar_prefetch = 0 : i64, scratch_operands = 1 : i64, tpu.core_type = #tpu.core_type<tc>, window_params = [{transform_indices = @transform_0, window_bounds = array<i64: 2, 8, 16>}, {transform_indices = @transform_1, window_bounds = array<i64: 2, 8, 8>}, {pipeline_mode = #tpu.pipeline_mode<synchronous>, transform_indices = @transform_2, window_bounds = array<i64: 8, 4>}, {pipeline_mode = #tpu.pipeline_mode<synchronous>, transform_indices = @transform_3, window_bounds = array<i64: 1, 4>}, {pipeline_mode = #tpu.pipeline_mode<synchronous>, transform_indices = @transform_4, window_bounds = array<i64: 12, 4>}, {pipeline_mode = #tpu.pipeline_mode<synchronous>, transform_indices = @transform_5, window_bounds = array<i64: 1, 4>}, {pipeline_mode = #tpu.pipeline_mode<synchronous>, transform_indices = @transform_6, window_bounds = array<i64: 16, 12>}, {pipeline_mode = #tpu.pipeline_mode<synchronous>, transform_indices = @transform_7, window_bounds = array<i64: 16, 1>}, {transform_indices = @transform_8, window_bounds = array<i64: 2, 16, 8>}]} {
    %cst = arith.constant 0.000000e+00 : f32
    %0 = vector.broadcast %cst : f32 to vector<1x4xf32>
    %c0 = arith.constant 0 : index
    %c0_0 = arith.constant 0 : index
    %1 = vector.load %arg10[%c0, %c0_0] : memref<18x4xf32, #tpu.memory_space<vmem>>, vector<1x4xf32>
    tpu.vector_store %arg10[%c0, %c0_0], %0 {strides = array<i32>} : memref<18x4xf32, #tpu.memory_space<vmem>>, vector<1x4xf32>,
    %c17 = arith.constant 17 : index
    %c0_1 = arith.constant 0 : index
    %2 = vector.load %arg10[%c17, %c0_1] : memref<18x4xf32, #tpu.memory_space<vmem>>, vector<1x4xf32>
    tpu.vector_store %arg10[%c17, %c0_1], %0 {strides = array<i32>} : memref<18x4xf32, #tpu.memory_space<vmem>>, vector<1x4xf32>,
    %c0_2 = arith.constant 0 : index
    %c0_3 = arith.constant 0 : index
    %3 = vector.load %arg3[%c0_2, %c0_3] : memref<8x4xbf16, #tpu.memory_space<vmem>>, vector<8x4xbf16>
    %c0_4 = arith.constant 0 : index
    %c0_5 = arith.constant 0 : index
    %4 = vector.load %arg4[%c0_4, %c0_5] : memref<1x4xf32, #tpu.memory_space<vmem>>, vector<1x4xf32>
    %c0_6 = arith.constant 0 : index
    %c0_7 = arith.constant 0 : index
    %5 = vector.load %arg5[%c0_6, %c0_7] : memref<12x4xbf16, #tpu.memory_space<vmem>>, vector<12x4xbf16>
    %c0_8 = arith.constant 0 : index
    %c0_9 = arith.constant 0 : index
    %6 = vector.load %arg6[%c0_8, %c0_9] : memref<1x4xf32, #tpu.memory_space<vmem>>, vector<1x4xf32>
    %c0_10 = arith.constant 0 : index
    %c0_11 = arith.constant 0 : index
    %7 = vector.load %arg7[%c0_10, %c0_11] : memref<16x12xbf16, #tpu.memory_space<vmem>>, vector<16x12xbf16>
    %c0_12 = arith.constant 0 : index
    %c0_13 = arith.constant 0 : index
    %8 = vector.load %arg8[%c0_12, %c0_13] : memref<16x1xf32, #tpu.memory_space<vmem>>, vector<16x1xf32>
    %c0_14 = arith.constant 0 : index
    %c0_15 = arith.constant 0 : index
    %c0_16 = arith.constant 0 : index
    %9 = vector.load %arg1[%c0_14, %c0_15, %c0_16] : memref<2x8x16xf32, #tpu.memory_space<vmem>>, vector<1x8x16xf32>
    %10 = vector.shape_cast %9 : vector<1x8x16xf32> to vector<8x16xf32>
    %11 = arith.truncf %10 : vector<8x16xf32> to vector<8x16xbf16>
    %cst_17 = arith.constant dense<0.000000e+00> : vector<16x4xf32>
    %12 = tpu.matmul %11, %3, %cst_17 {dimension_numbers = #tpu.dot_dimension_numbers<[0], [0], [1], [1], [0, 1, 1, 1], [], []>} : vector<8x16xbf16>, vector<8x4xbf16>, vector<16x4xf32> -> vector<16x4xf32>
    %13 = vector.broadcast %4 : vector<1x4xf32> to vector<16x4xf32>
    %14 = arith.addf %12, %13 : vector<16x4xf32>
    %cst_18 = arith.constant 0.000000e+00 : f32
    %15 = vector.broadcast %cst_18 : f32 to vector<16x4xf32>
    %16 = arith.maximumf %14, %15 : vector<16x4xf32>
    %c1 = arith.constant 1 : index
    %c0_19 = arith.constant 0 : index
    %17 = vector.load %arg10[%c1, %c0_19] : memref<18x4xf32, #tpu.memory_space<vmem>>, vector<16x4xf32>
    tpu.vector_store %arg10[%c1, %c0_19], %16 {strides = array<i32>} : memref<18x4xf32, #tpu.memory_space<vmem>>, vector<16x4xf32>,
    %c0_20 = arith.constant 0 : index
    %c0_21 = arith.constant 0 : index
    %18 = tpu.strided_load %arg10[%c0_20, %c0_21] {strides = array<i32: 2, 1>} : memref<18x4xf32, #tpu.memory_space<vmem>>, vector<8x4xf32>
    %19 = arith.truncf %18 : vector<8x4xf32> to vector<8x4xbf16>
    %c1_22 = arith.constant 1 : index
    %c0_23 = arith.constant 0 : index
    %20 = tpu.strided_load %arg10[%c1_22, %c0_23] {strides = array<i32: 2, 1>} : memref<18x4xf32, #tpu.memory_space<vmem>>, vector<8x4xf32>
    %21 = arith.truncf %20 : vector<8x4xf32> to vector<8x4xbf16>
    %c2 = arith.constant 2 : index
    %c0_24 = arith.constant 0 : index
    %22 = tpu.strided_load %arg10[%c2, %c0_24] {strides = array<i32: 2, 1>} : memref<18x4xf32, #tpu.memory_space<vmem>>, vector<8x4xf32>
    %23 = arith.truncf %22 : vector<8x4xf32> to vector<8x4xbf16>
    %24 = tpu.concatenate %19, %21, %23 in 1 : vector<8x4xbf16>, vector<8x4xbf16>, vector<8x4xbf16> -> vector<8x12xbf16>
    %cst_25 = arith.constant dense<0.000000e+00> : vector<8x4xf32>
    %25 = tpu.matmul %24, %5, %cst_25 {dimension_numbers = #tpu.dot_dimension_numbers<[1], [0], [0], [1], [0, 0, 1, 1], [], []>} : vector<8x12xbf16>, vector<12x4xbf16>, vector<8x4xf32> -> vector<8x4xf32>
    %26 = vector.broadcast %6 : vector<1x4xf32> to vector<8x4xf32>
    %27 = arith.addf %25, %26 : vector<8x4xf32>
    %cst_26 = arith.constant 0.000000e+00 : f32
    %28 = vector.broadcast %cst_26 : f32 to vector<8x4xf32>
    %29 = arith.maximumf %27, %28 : vector<8x4xf32>
    %30 = arith.truncf %29 : vector<8x4xf32> to vector<8x4xbf16>
    %c0_27 = arith.constant 0 : index
    %c0_28 = arith.constant 0 : index
    %c0_29 = arith.constant 0 : index
    %31 = vector.load %arg2[%c0_27, %c0_28, %c0_29] : memref<2x8x8xbf16, #tpu.memory_space<vmem>>, vector<1x8x8xbf16>
    %32 = vector.shape_cast %31 : vector<1x8x8xbf16> to vector<8x8xbf16>
    %33 = tpu.concatenate %30, %32 in 1 : vector<8x4xbf16>, vector<8x8xbf16> -> vector<8x12xbf16>
    %cst_30 = arith.constant dense<0.000000e+00> : vector<16x8xf32>
    %34 = tpu.matmul %7, %33, %cst_30 {dimension_numbers = #tpu.dot_dimension_numbers<[1], [1], [0], [0], [0, 0, 1, 0], [], []>} : vector<16x12xbf16>, vector<8x12xbf16>, vector<16x8xf32> -> vector<16x8xf32>
    %35 = vector.broadcast %8 : vector<16x1xf32> to vector<16x8xf32>
    %36 = arith.addf %34, %35 : vector<16x8xf32>
    %cst_31 = arith.constant 0.000000e+00 : f32
    %37 = vector.broadcast %cst_31 : f32 to vector<16x8xf32>
    %38 = arith.maximumf %36, %37 : vector<16x8xf32>
    %c0_32 = arith.constant 0 : index
    %c0_33 = arith.constant 0 : index
    %c0_34 = arith.constant 0 : index
    %39 = vector.load %arg9[%c0_32, %c0_33, %c0_34] : memref<2x16x8xf32, #tpu.memory_space<vmem>>, vector<1x16x8xf32>
    %40 = vector.shape_cast %39 : vector<1x16x8xf32> to vector<16x8xf32>
    %41 = vector.shape_cast %38 : vector<16x8xf32> to vector<1x16x8xf32>
    tpu.vector_store %arg9[%c0_32, %c0_33, %c0_34], %41 {strides = array<i32>} : memref<2x16x8xf32, #tpu.memory_space<vmem>>, vector<1x16x8xf32>,
    %c1_35 = arith.constant 1 : index
    %c0_36 = arith.constant 0 : index
    %c0_37 = arith.constant 0 : index
    %42 = vector.load %arg1[%c1_35, %c0_36, %c0_37] : memref<2x8x16xf32, #tpu.memory_space<vmem>>, vector<1x8x16xf32>
    %43 = vector.shape_cast %42 : vector<1x8x16xf32> to vector<8x16xf32>
    %44 = arith.truncf %43 : vector<8x16xf32> to vector<8x16xbf16>
    %cst_38 = arith.constant dense<0.000000e+00> : vector<16x4xf32>
    %45 = tpu.matmul %44, %3, %cst_38 {dimension_numbers = #tpu.dot_dimension_numbers<[0], [0], [1], [1], [0, 1, 1, 1], [], []>} : vector<8x16xbf16>, vector<8x4xbf16>, vector<16x4xf32> -> vector<16x4xf32>
    %46 = vector.broadcast %4 : vector<1x4xf32> to vector<16x4xf32>
    %47 = arith.addf %45, %46 : vector<16x4xf32>
    %cst_39 = arith.constant 0.000000e+00 : f32
    %48 = vector.broadcast %cst_39 : f32 to vector<16x4xf32>
    %49 = arith.maximumf %47, %48 : vector<16x4xf32>
    %c1_40 = arith.constant 1 : index
    %c0_41 = arith.constant 0 : index
    %50 = vector.load %arg10[%c1_40, %c0_41] : memref<18x4xf32, #tpu.memory_space<vmem>>, vector<16x4xf32>
    tpu.vector_store %arg10[%c1_40, %c0_41], %49 {strides = array<i32>} : memref<18x4xf32, #tpu.memory_space<vmem>>, vector<16x4xf32>,
    %c0_42 = arith.constant 0 : index
    %c0_43 = arith.constant 0 : index
    %51 = tpu.strided_load %arg10[%c0_42, %c0_43] {strides = array<i32: 2, 1>} : memref<18x4xf32, #tpu.memory_space<vmem>>, vector<8x4xf32>
    %52 = arith.truncf %51 : vector<8x4xf32> to vector<8x4xbf16>
    %c1_44 = arith.constant 1 : index
    %c0_45 = arith.constant 0 : index
    %53 = tpu.strided_load %arg10[%c1_44, %c0_45] {strides = array<i32: 2, 1>} : memref<18x4xf32, #tpu.memory_space<vmem>>, vector<8x4xf32>
    %54 = arith.truncf %53 : vector<8x4xf32> to vector<8x4xbf16>
    %c2_46 = arith.constant 2 : index
    %c0_47 = arith.constant 0 : index
    %55 = tpu.strided_load %arg10[%c2_46, %c0_47] {strides = array<i32: 2, 1>} : memref<18x4xf32, #tpu.memory_space<vmem>>, vector<8x4xf32>
    %56 = arith.truncf %55 : vector<8x4xf32> to vector<8x4xbf16>
    %57 = tpu.concatenate %52, %54, %56 in 1 : vector<8x4xbf16>, vector<8x4xbf16>, vector<8x4xbf16> -> vector<8x12xbf16>
    %cst_48 = arith.constant dense<0.000000e+00> : vector<8x4xf32>
    %58 = tpu.matmul %57, %5, %cst_48 {dimension_numbers = #tpu.dot_dimension_numbers<[1], [0], [0], [1], [0, 0, 1, 1], [], []>} : vector<8x12xbf16>, vector<12x4xbf16>, vector<8x4xf32> -> vector<8x4xf32>
    %59 = vector.broadcast %6 : vector<1x4xf32> to vector<8x4xf32>
    %60 = arith.addf %58, %59 : vector<8x4xf32>
    %cst_49 = arith.constant 0.000000e+00 : f32
    %61 = vector.broadcast %cst_49 : f32 to vector<8x4xf32>
    %62 = arith.maximumf %60, %61 : vector<8x4xf32>
    %63 = arith.truncf %62 : vector<8x4xf32> to vector<8x4xbf16>
    %c1_50 = arith.constant 1 : index
    %c0_51 = arith.constant 0 : index
    %c0_52 = arith.constant 0 : index
    %64 = vector.load %arg2[%c1_50, %c0_51, %c0_52] : memref<2x8x8xbf16, #tpu.memory_space<vmem>>, vector<1x8x8xbf16>
    %65 = vector.shape_cast %64 : vector<1x8x8xbf16> to vector<8x8xbf16>
    %66 = tpu.concatenate %63, %65 in 1 : vector<8x4xbf16>, vector<8x8xbf16> -> vector<8x12xbf16>
    %cst_53 = arith.constant dense<0.000000e+00> : vector<16x8xf32>
    %67 = tpu.matmul %7, %66, %cst_53 {dimension_numbers = #tpu.dot_dimension_numbers<[1], [1], [0], [0], [0, 0, 1, 0], [], []>} : vector<16x12xbf16>, vector<8x12xbf16>, vector<16x8xf32> -> vector<16x8xf32>
    %68 = vector.broadcast %8 : vector<16x1xf32> to vector<16x8xf32>
    %69 = arith.addf %67, %68 : vector<16x8xf32>
    %cst_54 = arith.constant 0.000000e+00 : f32
    %70 = vector.broadcast %cst_54 : f32 to vector<16x8xf32>
    %71 = arith.maximumf %69, %70 : vector<16x8xf32>
    %c1_55 = arith.constant 1 : index
    %c0_56 = arith.constant 0 : index
    %c0_57 = arith.constant 0 : index
    %72 = vector.load %arg9[%c1_55, %c0_56, %c0_57] : memref<2x16x8xf32, #tpu.memory_space<vmem>>, vector<1x16x8xf32>
    %73 = vector.shape_cast %72 : vector<1x16x8xf32> to vector<16x8xf32>
    %74 = vector.shape_cast %71 : vector<16x8xf32> to vector<1x16x8xf32>
    tpu.vector_store %arg9[%c1_55, %c0_56, %c0_57], %74 {strides = array<i32>} : memref<2x16x8xf32, #tpu.memory_space<vmem>>, vector<1x16x8xf32>,
    return
  }
  func.func @transform_0(%arg0: i32) -> (i32, i32, i32) {
    %c0_i32 = arith.constant 0 : i32
    %c0_i32_0 = arith.constant 0 : i32
    %c0_i32_1 = arith.constant 0 : i32
    return %arg0, %c0_i32, %c0_i32_0 : i32, i32, i32
  }
  func.func @transform_1(%arg0: i32) -> (i32, i32, i32) {
    %c0_i32 = arith.constant 0 : i32
    %c0_i32_0 = arith.constant 0 : i32
    %c0_i32_1 = arith.constant 0 : i32
    return %arg0, %c0_i32, %c0_i32_0 : i32, i32, i32
  }
  func.func @transform_2(%arg0: i32) -> (i32, i32) {
    %c0_i32 = arith.constant 0 : i32
    %c0_i32_0 = arith.constant 0 : i32
    %c0_i32_1 = arith.constant 0 : i32
    return %c0_i32, %c0_i32_0 : i32, i32
  }
  func.func @transform_3(%arg0: i32) -> (i32, i32) {
    %c0_i32 = arith.constant 0 : i32
    %c0_i32_0 = arith.constant 0 : i32
    %c0_i32_1 = arith.constant 0 : i32
    return %c0_i32, %c0_i32_0 : i32, i32
  }
  func.func @transform_4(%arg0: i32) -> (i32, i32) {
    %c0_i32 = arith.constant 0 : i32
    %c0_i32_0 = arith.constant 0 : i32
    %c0_i32_1 = arith.constant 0 : i32
    return %c0_i32, %c0_i32_0 : i32, i32
  }
  func.func @transform_5(%arg0: i32) -> (i32, i32) {
    %c0_i32 = arith.constant 0 : i32
    %c0_i32_0 = arith.constant 0 : i32
    %c0_i32_1 = arith.constant 0 : i32
    return %c0_i32, %c0_i32_0 : i32, i32
  }
  func.func @transform_6(%arg0: i32) -> (i32, i32) {
    %c0_i32 = arith.constant 0 : i32
    %c0_i32_0 = arith.constant 0 : i32
    %c0_i32_1 = arith.constant 0 : i32
    return %c0_i32, %c0_i32_0 : i32, i32
  }
  func.func @transform_7(%arg0: i32) -> (i32, i32) {
    %c0_i32 = arith.constant 0 : i32
    %c0_i32_0 = arith.constant 0 : i32
    %c0_i32_1 = arith.constant 0 : i32
    return %c0_i32, %c0_i32_0 : i32, i32
  }
  func.func @transform_8(%arg0: i32) -> (i32, i32, i32) {
    %c0_i32 = arith.constant 0 : i32
    %c0_i32_0 = arith.constant 0 : i32
    %c0_i32_1 = arith.constant 0 : i32
    return %arg0, %c0_i32, %c0_i32_0 : i32, i32, i32
  }
}

</mosaic_0001>

<bundles_post_ra>
// kernel: tpu_custom_call.1
= control target key start
LH: loop header
LB: loop body
LE: loop exit
PB: predicated region body
PF: predicated region fallthrough
CT: control target
= control target key end

     0   :  { %vm70_vm0 = vcmask 1043456   ;;  %v537_v1 = vmov 0.0   ;;  %vm538_vm1 = vmmov 0   ;;  %vm66_vm2 = vcmask 64512   ;;  %s689_s0 = inlined_call_operand.vmem [shape: f32[2,8,16], index: 0, kind: input, shape index: {}]   ;;  %s690_s2 = inlined_call_operand.vmem [shape: bf16[8,4], index: 2, kind: input, shape index: {}]   ;;  %s691_s4 = inlined_call_operand.vmem [shape: bf16[12,4], index: 4, kind: input, shape index: {}]   ;;  %s692_s3 = inlined_call_operand.vmem [shape: f32[1,4], index: 3, kind: input, shape index: {}]   ;;  %s693_s1 = inlined_call_operand.vmem [shape: bf16[2,8,8], index: 1, kind: input, shape index: {}]   ;;  %s694_s6 = inlined_call_operand.vmem [shape: bf16[16,12], index: 6, kind: input, shape index: {}]   ;;  %s695_s5 = inlined_call_operand.vmem [shape: f32[1,4], index: 5, kind: input, shape index: {}]   ;;  %s696_s7 = inlined_call_operand.vmem [shape: f32[16,1], index: 7, kind: input, shape index: {}]   ;;  %s697_s8 = inlined_call_operand.vmem [shape: f32[2,16,8], index: 8, kind: output, shape index: {}]  }
   0x1   :  { %v42_v0 = vld [vmem:[%s689_s0] sm:$0xff]  ;;  %491 = vmatprep.subr.bf16.mxu0 %v537_v1  ;;  %493 = vmatprep.mubr.msk.bf16.mxu0 %vm538_vm1, %v537_v1  ;;  %vm30_vm3 = vcmask 24576   ;;  %vm153_vm4 = vcmask 1045504   ;;  %vm117_vm5 = vcmask 31744   ;;  %v471_v22 = vld [vmem:[%s689_s0 + $0x8] sm:$0xff]  ;;  %vm150_vm6 = vcmask 97280  }
   0x2   :  { %v33_v2 = vld [vmem:[%s690_s2] sm:$0xf]  ;;  %v43_v3 = vpack.c.bf16 %v42_v0, %v42_v0  ;;  %497 = vmatprep.subr.bf16.mxu1 %v537_v1  ;;  %499 = vmatprep.mubr.msk.bf16.mxu1 %vm538_vm1, %v537_v1  ;;  %31 = vst.msk [vmem:[#allocation2] sm:$0x1] %vm30_vm3, %v537_v1  ;;  %v275_v23 = vpack.c.bf16 %v471_v22, %v471_v22  ;;  %v541_v51 = vmov 0   ;;  %v41_v58 = vld [vmem:[%s696_s7 + $0x8] sm:$0xff] }
   0x3   :  { %v72_v4 = vsel %vm70_vm0, %v33_v2, 0  ;;  %v533_v6 = vld [vmem:[%s691_s4] sm:$0x3f]   ;;  %s540_s4 = smov 4  }
   0x4   :  { %492 = vmatpush3.bf16.msra.mxu0 %v72_v4  ;;  %50 = vxpose.xlu0.c.b16.start.end [1/1] (short) (narrow) %v43_v3, 16  ;;  %v155_v7 = vsel %vm153_vm4, %v533_v6, 0  ;;  %v611_v8 = vld [vmem:[%s692_s3] ss:$0 sm:$0xff]  ;;  %s539_s3 = smov 8  }
   0x5   :  { %503 = vmatprep.subr.bf16.mxu0 %v537_v1  ;;  %498 = vmatpush3.bf16.msra.mxu1 %v155_v7  ;;  %v534_v21 = vld [vmem:[%s693_s1] ss:$0 sps:$4 sm:$0xff]   ;;  %v536_v56 = vld [vmem:[%s693_s1 + $0x4] ss:$0 sps:$4 sm:$0xff]  }
   0x6   :  { %509 = vmatprep.subr.bf16.mxu1 %v537_v1  ;;  %v638_v31 = vld [vmem:[%s695_s5] ss:$0 sm:$0xff] }
   0x7   :  { %v535_v42 = vld [vmem:[%s694_s6] sm:$0xff]  }
   0x8   :  { %v40_v57 = vld [vmem:[%s696_s7] sm:$0xff] }
   0xd   :  { %532 = vset.pattern.permute.xlu0 %v541_v51 }
  0x6a   :  { %v58_v5 = vpop.trf.xlu0 }
  0x6b   :  { %494 = vmatmul.mubr.msk.bf16.vlgmr.msra.gmra.mrb[0].mxu0 %vm66_vm2, %v58_v5 }
  0x6c   :  { %505 = vmatprep.mubr.msk.bf16.mxu0 %vm538_vm1, %v537_v1 }
 0x13e   :  { %v108_v9 = vpop.f32.mrb[0].mxu0 }
 0x13f   :  { %v109_v10 = vadd.f32 %v611_v8, %v108_v9  ;;  %v495_v11 = vpop.f32.mrb[1].mxu0 }
 0x140   :  { %v111_v12 = vpop.f32.mrb[2].mxu0 }
 0x141   :  { %v115_v13 = vmax.f32 %v109_v10, 0.0  ;;  %v112_v14 = vadd.f32 %v611_v8, %v111_v12  ;;  %v496_v15 = vpop.f32.mrb[3].mxu0 }
 0x143   :  { %118 = vst.msk [vmem:[#allocation2 + $0x1] sm:$0xff] %vm117_vm5, %v115_v13  ;;  %v116_v16 = vmax.f32 %v112_v14, 0.0 }
 0x145   :  { %119 = vst.msk [vmem:[#allocation2 + $0x9] sm:$0xff] %vm117_vm5, %v116_v16 }
 0x14c   :  { %v126_v17 = vld [vmem:[#allocation2 + $0x2] ss:$2 sm:$0xff]  ;;  %v123_v18 = vld [vmem:[#allocation2 + $0x1] ss:$2 sm:$0xff] }
 0x14d   :  { %v127_v19 = vpack.c.bf16 %v126_v17, %v126_v17  ;;  %v124_v20 = vpack.c.bf16 %v123_v18, %v123_v18  ;;  %v120_v24 = vld [vmem:[#allocation2] ss:$2 sm:$0xff] }
 0x14e   :  { %v121_v25 = vpack.c.bf16 %v120_v24, %v120_v24 }
 0x14f   :  { %132 = vrot.lane.b32.xlu1 %v127_v19, %s539_s3  ;;  %129 = vrot.lane.b32.xlu0 %v124_v20, %s540_s4 }
 0x153   :  { %203 = vrot.lane.b32.xlu0 %v534_v21, %s540_s4 }
 0x172   :  { %276 = vxpose.xlu1.c.b16.start.end [1/1] (short) (narrow) %v275_v23, 16 }
 0x1c1   :  { %v133_v26 = vpop.permute.xlu1 %132  ;;  %v130_v27 = vpop.permute.xlu0 %129 }
 0x1c2   :  { %v136_v28 = vsel %vm117_vm5, %v121_v25, %v130_v27 }
 0x1c3   :  { %v138_v29 = vsel %vm66_vm2, %v136_v28, %v133_v26 }
 0x1c4   :  { %500 = vmatmul.mubr.msk.bf16.vlgmr.msra.gmra.mrb[0].mxu1 %vm150_vm6, %v138_v29 }
 0x1c5   :  { %510 = vmatpush3.bf16.msra.mxu1 %v72_v4  ;;  %511 = vmatprep.mubr.msk.bf16.mxu1 %vm538_vm1, %v537_v1  ;;  %v204_v38 = vpop.permute.xlu0 %203 }
 0x1c6   :  { %521 = vmatprep.subr.bf16.mxu1 %v537_v1 }
 0x1d8   :  { %v284_v30 = vpop.trf.xlu1 }
 0x1d9   :  { %512 = vmatmul.mubr.msk.bf16.vlgmr.msra.gmra.mrb[4].mxu1 %vm66_vm2, %v284_v30 }
 0x1da   :  { %523 = vmatprep.mubr.msk.bf16.mxu1 %vm538_vm1, %v537_v1 }
 0x297   :  { %v191_v32 = vpop.f32.mrb[0].mxu1 }
 0x298   :  { %v192_v33 = vadd.f32 %v638_v31, %v191_v32  ;;  %v501_v34 = vpop.f32.mrb[1].mxu1 }
 0x299   :  { %v194_v35 = vpop.f32.mrb[2].mxu1 }
 0x29a   :  { %v197_v36 = vmax.f32 %v192_v33, 0.0  ;;  %v502_v37 = vpop.f32.mrb[3].mxu1 }
 0x29c   :  { %v198_v39 = vpack.c.bf16 %v197_v36, %v197_v36 }
 0x29e   :  { %v207_v40 = vsel %vm117_vm5, %v198_v39, %v204_v38 }
 0x29f   :  { %v226_v41 = vsel %vm150_vm6, %v207_v40, 0 }
 0x2a0   :  { %504 = vmatpush3.bf16.xpose.msra.mxu0 %v226_v41 }
 0x2a1   :  { %515 = vmatprep.subr.bf16.mxu0 %v537_v1 }
 0x2a7   :  { %506 = vmatmul.mubr.msk.bf16.vlgmr.msra.gmra.mrb[4].mxu0 %vm150_vm6, %v535_v42 }
 0x2a8   :  { %516 = vmatpush3.bf16.msra.mxu0 %v155_v7  ;;  %517 = vmatprep.mubr.msk.bf16.mxu0 %vm538_vm1, %v537_v1 }
 0x2ac   :  { %v329_v43 = vpop.f32.mrb[4].mxu1 }
 0x2ad   :  { %v330_v44 = vadd.f32 %v611_v8, %v329_v43  ;;  %v513_v45 = vpop.f32.mrb[5].mxu1 }
 0x2ae   :  { %v332_v46 = vpop.f32.mrb[6].mxu1 }
 0x2af   :  { %v336_v47 = vmax.f32 %v330_v44, 0.0  ;;  %v333_v48 = vadd.f32 %v611_v8, %v332_v46  ;;  %v514_v49 = vpop.f32.mrb[7].mxu1 }
 0x2b1   :  { %338 = vst.msk [vmem:[#allocation2 + $0x1] sm:$0xff] %vm117_vm5, %v336_v47  ;;  %v337_v50 = vmax.f32 %v333_v48, 0.0 }
 0x2b3   :  { %339 = vst.msk [vmem:[#allocation2 + $0x9] sm:$0xff] %vm117_vm5, %v337_v50 }
 0x2ba   :  { %v342_v52 = vld [vmem:[#allocation2 + $0x1] ss:$2 sm:$0xff]  ;;  %v344_v54 = vld [vmem:[#allocation2 + $0x2] ss:$2 sm:$0xff] }
 0x2bb   :  { %v343_v53 = vpack.c.bf16 %v342_v52, %v342_v52  ;;  %v345_v55 = vpack.c.bf16 %v344_v54, %v344_v54  ;;  %v340_v59 = vld [vmem:[#allocation2] ss:$2 sm:$0xff] }
 0x2bc   :  { %v341_v61 = vpack.c.bf16 %v340_v59, %v340_v59 }
 0x2bd   :  { %347 = vrot.lane.b32.xlu0 %v343_v53, %s540_s4 }
 0x2c1   :  { %350 = vrot.lane.b32.xlu0 %v345_v55, %s539_s3 }
 0x2c5   :  { %406 = vrot.lane.b32.xlu0 %v536_v56, %s540_s4 }
 0x2c9   :  { %210 = vperm.xlu0 %532, %v40_v57  }
 0x2cd   :  { %215 = vperm.xlu0 %532, %v41_v58  }
 0x32f   :  { %v348_v60 = vpop.permute.xlu0 %347 }
 0x330   :  { %v354_v62 = vsel %vm117_vm5, %v341_v61, %v348_v60 }
 0x333   :  { %v351_v63 = vpop.permute.xlu0 %350 }
 0x334   :  { %v356_v0 = vsel %vm66_vm2, %v354_v62, %v351_v63 }
 0x335   :  { %518 = vmatmul.mubr.msk.bf16.vlgmr.msra.gmra.mrb[8].mxu0 %vm150_vm6, %v356_v0 }
 0x337   :  { %v407_v1 = vpop.permute.xlu0 %406 }
 0x348   :  { %v211_v2 = vpop.permute.xlu0 %210 }
 0x34c   :  { %v216_v4 = vpop.permute.xlu0 %215 }
 0x37a   :  { %v262_v3 = vpop.f32.mrb[4].mxu0 }
 0x37b   :  { %v263_v5 = vadd.f32 %v262_v3, %v211_v2  ;;  %v507_v6 = vpop.f32.mrb[5].mxu0 }
 0x37c   :  { %v265_v7 = vpop.f32.mrb[6].mxu0 }
 0x37d   :  { %v269_v8 = vmax.f32 %v263_v5, 0.0  ;;  %v266_v9 = vadd.f32 %v265_v7, %v216_v4  ;;  %v508_v10 = vpop.f32.mrb[7].mxu0 }
 0x37f   :  { %271 = vst.msk [vmem:[%s697_s8] sm:$0xff] %vm66_vm2, %v269_v8  ;;  %v270_v11 = vmax.f32 %v266_v9, 0.0 }
 0x381   :  { %272 = vst.msk [vmem:[%s697_s8 + $0x8] sm:$0xff] %vm66_vm2, %v270_v11 }
 0x408   :  { %v393_v12 = vpop.f32.mrb[8].mxu0 }
 0x409   :  { %v394_v13 = vadd.f32 %v638_v31, %v393_v12  ;;  %v519_v14 = vpop.f32.mrb[9].mxu0 }
 0x40a   :  { %v396_v15 = vpop.f32.mrb[10].mxu0 }
 0x40b   :  { %v399_v16 = vmax.f32 %v394_v13, 0.0  ;;  %v520_v17 = vpop.f32.mrb[11].mxu0 }
 0x40d   :  { %v400_v18 = vpack.c.bf16 %v399_v16, %v399_v16 }
 0x40f   :  { %v410_v19 = vsel %vm117_vm5, %v400_v18, %v407_v1 }
 0x410   :  { %v411_v20 = vsel %vm150_vm6, %v410_v19, 0 }
 0x411   :  { %522 = vmatpush3.bf16.xpose.msra.mxu1 %v411_v20 }
 0x418   :  { %524 = vmatmul.mubr.msk.bf16.vlgmr.msra.gmra.mrb[8].mxu1 %vm150_vm6, %v535_v42 }
 0x4eb   :  { %v447_v21 = vpop.f32.mrb[8].mxu1 }
 0x4ec   :  { %v448_v22 = vadd.f32 %v447_v21, %v211_v2  ;;  %v525_v23 = vpop.f32.mrb[9].mxu1 }
 0x4ed   :  { %v450_v24 = vpop.f32.mrb[10].mxu1 }
 0x4ee   :  { %v454_v25 = vmax.f32 %v448_v22, 0.0  ;;  %v451_v26 = vadd.f32 %v450_v24, %v216_v4  ;;  %v526_v27 = vpop.f32.mrb[11].mxu1 }
 0x4f0   :  { %477 = vst.msk [vmem:[%s697_s8 + $0x10] sm:$0xff] %vm66_vm2, %v454_v25  ;;  %v455_v28 = vmax.f32 %v451_v26, 0.0 }
 0x4f2   :  { %478 = vst.msk [vmem:[%s697_s8 + $0x18] sm:$0xff] %vm66_vm2, %v455_v28 }

</bundles_post_ra>
